<compile_context>
chip_gen: v7x
topology: tpu7x:2x2x1
jax: 0.10.0
libtpu: 0.0.40
codegen_flags: <defaults>
</compile_context>

<pallas_src>
import math

import jax
import jax.numpy as jnp
from jax.experimental import pallas as pl
from jax.experimental.pallas import tpu as pltpu


def _round_up(x, m):
    return ((x + m - 1) // m) * m


def _disc_kernel(data_ref, h_ref, w1a_ref, w1b_ref, b1_ref,
                 w2_ref, b2_ref, w3_ref, b3_ref, o_ref):
    # Layer 1: split-K matmul == relu(concat([data, h], 1) @ W1 + b1).
    h1 = (jnp.dot(data_ref[...], w1a_ref[...], preferred_element_type=jnp.float32)
          + jnp.dot(h_ref[...], w1b_ref[...], preferred_element_type=jnp.float32)
          + b1_ref[...])
    h1 = jnp.maximum(h1, 0.0)

    # Layer 2: relu(h1 @ W2 + b2)  (f32 accumulate; cast is a no-op for f32).
    h2 = jnp.dot(h1.astype(w2_ref.dtype), w2_ref[...],
                 preferred_element_type=jnp.float32) + b2_ref[...]
    h2 = jnp.maximum(h2, 0.0)

    # Layer 3: sigmoid(h2 @ W3 + b3)
    logits = jnp.dot(h2.astype(w3_ref.dtype), w3_ref[...],
                     preferred_element_type=jnp.float32) + b3_ref[...]
    o_ref[...] = jax.nn.sigmoid(logits).astype(o_ref.dtype)


def discriminator_forward(data, h, params, *, batch_tile=1024,
                          matmul_dtype=jnp.float32,
                          vmem_limit_bytes=48 * 1024 * 1024,
                          single_buffer_resident=True):
    """Equivalent of Discriminator_model.forward(data, h)."""
    W1, b1, W2, b2, W3, b3 = params

    B, dim = data.shape
    assert h.shape == (B, dim)
    assert W1.shape[0] == 2 * dim
    h1d = W1.shape[1]
    h2d = W2.shape[1]
    out_d = W3.shape[1]

    # Cast once here (not per grid step inside the kernel).  Biases stay f32
    # (they are added to the f32 accumulators).
    data = data.astype(matmul_dtype)
    h = h.astype(matmul_dtype)
    W1_top = W1[:dim, :].astype(matmul_dtype)     # replaces the activation concat
    W1_bot = W1[dim:, :].astype(matmul_dtype)
    W2m = W2.astype(matmul_dtype)
    W3m = W3.astype(matmul_dtype)
    b1r = b1.reshape(1, h1d).astype(jnp.float32)
    b2r = b2.reshape(1, h2d).astype(jnp.float32)
    b3r = b3.reshape(1, out_d).astype(jnp.float32)

    # Batch tile: multiple of the 8-row sublane, big enough to amortize the
    # ~0.35us per-step overhead, and capped so the grid has >= 2 steps when
    # B > 8 (so ("parallel",) can shard across v7x's two TensorCores).
    SUBLANE = 8
    tm = min(batch_tile, _round_up(pl.cdiv(B, 2), SUBLANE))
    tm = max(SUBLANE, _round_up(tm, SUBLANE))
    grid = (pl.cdiv(B, tm),)

    act_spec = pl.BlockSpec((tm, dim), lambda i: (i, 0))
    out_spec = pl.BlockSpec((tm, out_d), lambda i: (i, 0))

    def resident(shape):
        # Constant block index -> fetched once; single-buffer it to save VMEM.
        if single_buffer_resident:
            return pl.BlockSpec(shape, lambda i: (0, 0),
                                pipeline_mode=pl.Buffered(1))
        return pl.BlockSpec(shape, lambda i: (0, 0))

    # TODO(synk): if layer 1 ever becomes MXU-bound (large hidden_dim1, bf16),
    # merge the two split-K dots into one K=2*dim matmul via a manual VMEM
    # concat of the data/h tiles.
    return pl.pallas_call(
        _disc_kernel,
        out_shape=jax.ShapeDtypeStruct((B, out_d), jnp.float32),
        grid=grid,
        in_specs=[
            act_spec,                    # data tile
            act_spec,                    # h tile
            resident((dim, h1d)),        # W1_top
            resident((dim, h1d)),        # W1_bot
            resident((1, h1d)),          # b1
            resident((h1d, h2d)),        # W2
            resident((1, h2d)),          # b2
            resident((h2d, out_d)),      # W3
            resident((1, out_d)),        # b3
        ],
        out_specs=out_spec,
        compiler_params=pltpu.CompilerParams(
            dimension_semantics=("parallel",),
            vmem_limit_bytes=vmem_limit_bytes,
        ),
    )(data, h, W1_top, W1_bot, b1r, W2m, b2r, W3m, b3r)


def xavier_init(key, shape):
    # Matches GAIN's xavier_init: normal with stddev = 1/sqrt(shape[0]/2)
    stddev = 1.0 / math.sqrt(shape[0] / 2.0)
    return jax.random.normal(key, shape, dtype=jnp.float32) * stddev


def make_params(key, dim, hidden_dim1, hidden_dim2):
    k1, k2, k3 = jax.random.split(key, 3)
    W1 = xavier_init(k1, (dim * 2, hidden_dim1))
    b1 = jnp.zeros((hidden_dim1,), jnp.float32)
    W2 = xavier_init(k2, (hidden_dim1, hidden_dim2))
    b2 = jnp.zeros((hidden_dim2,), jnp.float32)
    W3 = xavier_init(k3, (hidden_dim2, dim))
    b3 = jnp.zeros((dim,), jnp.float32)
    return W1, b1, W2, b2, W3, b3


if __name__ == "__main__":
    key = jax.random.PRNGKey(0)
    kp, kd, kh = jax.random.split(key, 3)

    batch = 8
    dim = 16
    hidden_dim1 = 32
    hidden_dim2 = 32

    params = make_params(kp, dim, hidden_dim1, hidden_dim2)
    data = jax.random.normal(kd, (batch, dim), dtype=jnp.float32)
    h = jax.random.uniform(kh, (batch, dim), dtype=jnp.float32)

    fwd = jax.jit(discriminator_forward,
                  static_argnames=("batch_tile", "matmul_dtype",
                                   "vmem_limit_bytes", "single_buffer_resident"))
    try:
        out = jax.block_until_ready(fwd(data, h, params))
    except Exception:
        # Fallback if this JAX build rejects single-buffered resident blocks.
        out = jax.block_until_ready(
            fwd(data, h, params, single_buffer_resident=False))

    # Pure-JAX reference (matches the PyTorch forward exactly).
    W1, b1, W2, b2, W3, b3 = params
    inp = jnp.concatenate([data, h], axis=1)
    r1 = jax.nn.relu(inp @ W1 + b1)
    r2 = jax.nn.relu(r1 @ W2 + b2)
    ref = jax.nn.sigmoid(r2 @ W3 + b3)

    assert out.shape == (batch, dim)
    assert jnp.allclose(out, ref, atol=1e-4, rtol=1e-4), (
        f"max abs err = {jnp.max(jnp.abs(out - ref))}")

    print("KERNEL_OK")
</pallas_src>

<mosaic_0001>
module attributes {stable_mosaic.version = 11 : i64} {
  func.func @_disc_kernel(%arg0: i32, %arg1: memref<8x16xf32, #tpu.memory_space<vmem>>, %arg2: memref<8x16xf32, #tpu.memory_space<vmem>>, %arg3: memref<16x32xf32, #tpu.memory_space<vmem>>, %arg4: memref<16x32xf32, #tpu.memory_space<vmem>>, %arg5: memref<1x32xf32, #tpu.memory_space<vmem>>, %arg6: memref<32x32xf32, #tpu.memory_space<vmem>>, %arg7: memref<1x32xf32, #tpu.memory_space<vmem>>, %arg8: memref<32x16xf32, #tpu.memory_space<vmem>>, %arg9: memref<1x16xf32, #tpu.memory_space<vmem>>, %arg10: memref<8x16xf32, #tpu.memory_space<vmem>>) attributes {dimension_semantics = [#tpu.dimension_semantics<parallel>], iteration_bounds = array<i64: 1>, scalar_prefetch = 0 : i64, scratch_operands = 0 : i64, tpu.core_type = #tpu.core_type<tc>, window_params = [{transform_indices = @transform_0, window_bounds = array<i64: 8, 16>}, {transform_indices = @transform_1, window_bounds = array<i64: 8, 16>}, {pipeline_mode = #tpu.pipeline_mode<synchronous>, transform_indices = @transform_2, window_bounds = array<i64: 16, 32>}, {pipeline_mode = #tpu.pipeline_mode<synchronous>, transform_indices = @transform_3, window_bounds = array<i64: 16, 32>}, {pipeline_mode = #tpu.pipeline_mode<synchronous>, transform_indices = @transform_4, window_bounds = array<i64: 1, 32>}, {pipeline_mode = #tpu.pipeline_mode<synchronous>, transform_indices = @transform_5, window_bounds = array<i64: 32, 32>}, {pipeline_mode = #tpu.pipeline_mode<synchronous>, transform_indices = @transform_6, window_bounds = array<i64: 1, 32>}, {pipeline_mode = #tpu.pipeline_mode<synchronous>, transform_indices = @transform_7, window_bounds = array<i64: 32, 16>}, {pipeline_mode = #tpu.pipeline_mode<synchronous>, transform_indices = @transform_8, window_bounds = array<i64: 1, 16>}, {transform_indices = @transform_9, window_bounds = array<i64: 8, 16>}]} {
    %c0 = arith.constant 0 : index
    %c0_0 = arith.constant 0 : index
    %0 = vector.load %arg1[%c0, %c0_0] : memref<8x16xf32, #tpu.memory_space<vmem>>, vector<8x16xf32>
    %c0_1 = arith.constant 0 : index
    %c0_2 = arith.constant 0 : index
    %1 = vector.load %arg3[%c0_1, %c0_2] : memref<16x32xf32, #tpu.memory_space<vmem>>, vector<16x32xf32>
    %cst = arith.constant dense<0.000000e+00> : vector<8x32xf32>
    %2 = tpu.matmul %0, %1, %cst {dimension_numbers = #tpu.dot_dimension_numbers<[1], [0], [0], [1], [0, 0, 1, 1], [], []>} : vector<8x16xf32>, vector<16x32xf32>, vector<8x32xf32> -> vector<8x32xf32>
    %c0_3 = arith.constant 0 : index
    %c0_4 = arith.constant 0 : index
    %3 = vector.load %arg2[%c0_3, %c0_4] : memref<8x16xf32, #tpu.memory_space<vmem>>, vector<8x16xf32>
    %c0_5 = arith.constant 0 : index
    %c0_6 = arith.constant 0 : index
    %4 = vector.load %arg4[%c0_5, %c0_6] : memref<16x32xf32, #tpu.memory_space<vmem>>, vector<16x32xf32>
    %cst_7 = arith.constant dense<0.000000e+00> : vector<8x32xf32>
    %5 = tpu.matmul %3, %4, %cst_7 {dimension_numbers = #tpu.dot_dimension_numbers<[1], [0], [0], [1], [0, 0, 1, 1], [], []>} : vector<8x16xf32>, vector<16x32xf32>, vector<8x32xf32> -> vector<8x32xf32>
    %6 = arith.addf %2, %5 : vector<8x32xf32>
    %c0_8 = arith.constant 0 : index
    %c0_9 = arith.constant 0 : index
    %7 = vector.load %arg5[%c0_8, %c0_9] : memref<1x32xf32, #tpu.memory_space<vmem>>, vector<1x32xf32>
    %8 = vector.broadcast %7 : vector<1x32xf32> to vector<8x32xf32>
    %9 = arith.addf %6, %8 : vector<8x32xf32>
    %cst_10 = arith.constant 0.000000e+00 : f32
    %10 = vector.broadcast %cst_10 : f32 to vector<8x32xf32>
    %11 = arith.maximumf %9, %10 : vector<8x32xf32>
    %c0_11 = arith.constant 0 : index
    %c0_12 = arith.constant 0 : index
    %12 = vector.load %arg6[%c0_11, %c0_12] : memref<32x32xf32, #tpu.memory_space<vmem>>, vector<32x32xf32>
    %cst_13 = arith.constant dense<0.000000e+00> : vector<8x32xf32>
    %13 = tpu.matmul %11, %12, %cst_13 {dimension_numbers = #tpu.dot_dimension_numbers<[1], [0], [0], [1], [0, 0, 1, 1], [], []>} : vector<8x32xf32>, vector<32x32xf32>, vector<8x32xf32> -> vector<8x32xf32>
    %c0_14 = arith.constant 0 : index
    %c0_15 = arith.constant 0 : index
    %14 = vector.load %arg7[%c0_14, %c0_15] : memref<1x32xf32, #tpu.memory_space<vmem>>, vector<1x32xf32>
    %15 = vector.broadcast %14 : vector<1x32xf32> to vector<8x32xf32>
    %16 = arith.addf %13, %15 : vector<8x32xf32>
    %cst_16 = arith.constant 0.000000e+00 : f32
    %17 = vector.broadcast %cst_16 : f32 to vector<8x32xf32>
    %18 = arith.maximumf %16, %17 : vector<8x32xf32>
    %c0_17 = arith.constant 0 : index
    %c0_18 = arith.constant 0 : index
    %19 = vector.load %arg8[%c0_17, %c0_18] : memref<32x16xf32, #tpu.memory_space<vmem>>, vector<32x16xf32>
    %cst_19 = arith.constant dense<0.000000e+00> : vector<8x16xf32>
    %20 = tpu.matmul %18, %19, %cst_19 {dimension_numbers = #tpu.dot_dimension_numbers<[1], [0], [0], [1], [0, 0, 1, 1], [], []>} : vector<8x32xf32>, vector<32x16xf32>, vector<8x16xf32> -> vector<8x16xf32>
    %c0_20 = arith.constant 0 : index
    %c0_21 = arith.constant 0 : index
    %21 = vector.load %arg9[%c0_20, %c0_21] : memref<1x16xf32, #tpu.memory_space<vmem>>, vector<1x16xf32>
    %22 = vector.broadcast %21 : vector<1x16xf32> to vector<8x16xf32>
    %23 = arith.addf %20, %22 : vector<8x16xf32>
    %24 = arith.negf %23 : vector<8x16xf32>
    %25 = math.exp %24 : vector<8x16xf32>
    %cst_22 = arith.constant 1.000000e+00 : f32
    %26 = vector.broadcast %cst_22 : f32 to vector<8x16xf32>
    %27 = arith.addf %26, %25 : vector<8x16xf32>
    %28 = arith.divf %26, %27 : vector<8x16xf32>
    %c0_23 = arith.constant 0 : index
    %c0_24 = arith.constant 0 : index
    %29 = vector.load %arg10[%c0_23, %c0_24] : memref<8x16xf32, #tpu.memory_space<vmem>>, vector<8x16xf32>
    tpu.vector_store %arg10[%c0_23, %c0_24], %28 {strides = array<i32>} : memref<8x16xf32, #tpu.memory_space<vmem>>, vector<8x16xf32>,
    return
  }
  func.func @transform_0(%arg0: i32) -> (i32, i32) {
    %c0_i32 = arith.constant 0 : i32
    %c0_i32_0 = arith.constant 0 : i32
    return %arg0, %c0_i32 : i32, i32
  }
  func.func @transform_1(%arg0: i32) -> (i32, i32) {
    %c0_i32 = arith.constant 0 : i32
    %c0_i32_0 = arith.constant 0 : i32
    return %arg0, %c0_i32 : i32, i32
  }
  func.func @transform_2(%arg0: i32) -> (i32, i32) {
    %c0_i32 = arith.constant 0 : i32
    %c0_i32_0 = arith.constant 0 : i32
    %c0_i32_1 = arith.constant 0 : i32
    return %c0_i32, %c0_i32_0 : i32, i32
  }
  func.func @transform_3(%arg0: i32) -> (i32, i32) {
    %c0_i32 = arith.constant 0 : i32
    %c0_i32_0 = arith.constant 0 : i32
    %c0_i32_1 = arith.constant 0 : i32
    return %c0_i32, %c0_i32_0 : i32, i32
  }
  func.func @transform_4(%arg0: i32) -> (i32, i32) {
    %c0_i32 = arith.constant 0 : i32
    %c0_i32_0 = arith.constant 0 : i32
    %c0_i32_1 = arith.constant 0 : i32
    return %c0_i32, %c0_i32_0 : i32, i32
  }
  func.func @transform_5(%arg0: i32) -> (i32, i32) {
    %c0_i32 = arith.constant 0 : i32
    %c0_i32_0 = arith.constant 0 : i32
    %c0_i32_1 = arith.constant 0 : i32
    return %c0_i32, %c0_i32_0 : i32, i32
  }
  func.func @transform_6(%arg0: i32) -> (i32, i32) {
    %c0_i32 = arith.constant 0 : i32
    %c0_i32_0 = arith.constant 0 : i32
    %c0_i32_1 = arith.constant 0 : i32
    return %c0_i32, %c0_i32_0 : i32, i32
  }
  func.func @transform_7(%arg0: i32) -> (i32, i32) {
    %c0_i32 = arith.constant 0 : i32
    %c0_i32_0 = arith.constant 0 : i32
    %c0_i32_1 = arith.constant 0 : i32
    return %c0_i32, %c0_i32_0 : i32, i32
  }
  func.func @transform_8(%arg0: i32) -> (i32, i32) {
    %c0_i32 = arith.constant 0 : i32
    %c0_i32_0 = arith.constant 0 : i32
    %c0_i32_1 = arith.constant 0 : i32
    return %c0_i32, %c0_i32_0 : i32, i32
  }
  func.func @transform_9(%arg0: i32) -> (i32, i32) {
    %c0_i32 = arith.constant 0 : i32
    %c0_i32_0 = arith.constant 0 : i32
    return %arg0, %c0_i32 : i32, i32
  }
}

module attributes {stable_mosaic.version = 11 : i64} {
  func.func @_disc_kernel(%arg0: i32, %arg1: memref<8x16xf32, #tpu.memory_space<vmem>>, %arg2: memref<8x16xf32, #tpu.memory_space<vmem>>, %arg3: memref<16x32xf32, #tpu.memory_space<vmem>>, %arg4: memref<16x32xf32, #tpu.memory_space<vmem>>, %arg5: memref<1x32xf32, #tpu.memory_space<vmem>>, %arg6: memref<32x32xf32, #tpu.memory_space<vmem>>, %arg7: memref<1x32xf32, #tpu.memory_space<vmem>>, %arg8: memref<32x16xf32, #tpu.memory_space<vmem>>, %arg9: memref<1x16xf32, #tpu.memory_space<vmem>>, %arg10: memref<8x16xf32, #tpu.memory_space<vmem>>) attributes {dimension_semantics = [#tpu.dimension_semantics<parallel>], iteration_bounds = array<i64: 1>, scalar_prefetch = 0 : i64, scratch_operands = 0 : i64, tpu.core_type = #tpu.core_type<tc>, window_params = [{transform_indices = @transform_0, window_bounds = array<i64: 8, 16>}, {transform_indices = @transform_1, window_bounds = array<i64: 8, 16>}, {pipeline_mode = #tpu.pipeline_mode<synchronous>, transform_indices = @transform_2, window_bounds = array<i64: 16, 32>}, {pipeline_mode = #tpu.pipeline_mode<synchronous>, transform_indices = @transform_3, window_bounds = array<i64: 16, 32>}, {pipeline_mode = #tpu.pipeline_mode<synchronous>, transform_indices = @transform_4, window_bounds = array<i64: 1, 32>}, {pipeline_mode = #tpu.pipeline_mode<synchronous>, transform_indices = @transform_5, window_bounds = array<i64: 32, 32>}, {pipeline_mode = #tpu.pipeline_mode<synchronous>, transform_indices = @transform_6, window_bounds = array<i64: 1, 32>}, {pipeline_mode = #tpu.pipeline_mode<synchronous>, transform_indices = @transform_7, window_bounds = array<i64: 32, 16>}, {pipeline_mode = #tpu.pipeline_mode<synchronous>, transform_indices = @transform_8, window_bounds = array<i64: 1, 16>}, {transform_indices = @transform_9, window_bounds = array<i64: 8, 16>}]} {
    %c0 = arith.constant 0 : index
    %c0_0 = arith.constant 0 : index
    %0 = vector.load %arg1[%c0, %c0_0] : memref<8x16xf32, #tpu.memory_space<vmem>>, vector<8x16xf32>
    %c0_1 = arith.constant 0 : index
    %c0_2 = arith.constant 0 : index
    %1 = vector.load %arg3[%c0_1, %c0_2] : memref<16x32xf32, #tpu.memory_space<vmem>>, vector<16x32xf32>
    %cst = arith.constant dense<0.000000e+00> : vector<8x32xf32>
    %2 = tpu.matmul %0, %1, %cst {dimension_numbers = #tpu.dot_dimension_numbers<[1], [0], [0], [1], [0, 0, 1, 1], [], []>} : vector<8x16xf32>, vector<16x32xf32>, vector<8x32xf32> -> vector<8x32xf32>
    %c0_3 = arith.constant 0 : index
    %c0_4 = arith.constant 0 : index
    %3 = vector.load %arg2[%c0_3, %c0_4] : memref<8x16xf32, #tpu.memory_space<vmem>>, vector<8x16xf32>
    %c0_5 = arith.constant 0 : index
    %c0_6 = arith.constant 0 : index
    %4 = vector.load %arg4[%c0_5, %c0_6] : memref<16x32xf32, #tpu.memory_space<vmem>>, vector<16x32xf32>
    %cst_7 = arith.constant dense<0.000000e+00> : vector<8x32xf32>
    %5 = tpu.matmul %3, %4, %cst_7 {dimension_numbers = #tpu.dot_dimension_numbers<[1], [0], [0], [1], [0, 0, 1, 1], [], []>} : vector<8x16xf32>, vector<16x32xf32>, vector<8x32xf32> -> vector<8x32xf32>
    %6 = arith.addf %2, %5 : vector<8x32xf32>
    %c0_8 = arith.constant 0 : index
    %c0_9 = arith.constant 0 : index
    %7 = vector.load %arg5[%c0_8, %c0_9] : memref<1x32xf32, #tpu.memory_space<vmem>>, vector<1x32xf32>
    %8 = vector.broadcast %7 : vector<1x32xf32> to vector<8x32xf32>
    %9 = arith.addf %6, %8 : vector<8x32xf32>
    %cst_10 = arith.constant 0.000000e+00 : f32
    %10 = vector.broadcast %cst_10 : f32 to vector<8x32xf32>
    %11 = arith.maximumf %9, %10 : vector<8x32xf32>
    %c0_11 = arith.constant 0 : index
    %c0_12 = arith.constant 0 : index
    %12 = vector.load %arg6[%c0_11, %c0_12] : memref<32x32xf32, #tpu.memory_space<vmem>>, vector<32x32xf32>
    %cst_13 = arith.constant dense<0.000000e+00> : vector<8x32xf32>
    %13 = tpu.matmul %11, %12, %cst_13 {dimension_numbers = #tpu.dot_dimension_numbers<[1], [0], [0], [1], [0, 0, 1, 1], [], []>} : vector<8x32xf32>, vector<32x32xf32>, vector<8x32xf32> -> vector<8x32xf32>
    %c0_14 = arith.constant 0 : index
    %c0_15 = arith.constant 0 : index
    %14 = vector.load %arg7[%c0_14, %c0_15] : memref<1x32xf32, #tpu.memory_space<vmem>>, vector<1x32xf32>
    %15 = vector.broadcast %14 : vector<1x32xf32> to vector<8x32xf32>
    %16 = arith.addf %13, %15 : vector<8x32xf32>
    %cst_16 = arith.constant 0.000000e+00 : f32
    %17 = vector.broadcast %cst_16 : f32 to vector<8x32xf32>
    %18 = arith.maximumf %16, %17 : vector<8x32xf32>
    %c0_17 = arith.constant 0 : index
    %c0_18 = arith.constant 0 : index
    %19 = vector.load %arg8[%c0_17, %c0_18] : memref<32x16xf32, #tpu.memory_space<vmem>>, vector<32x16xf32>
    %cst_19 = arith.constant dense<0.000000e+00> : vector<8x16xf32>
    %20 = tpu.matmul %18, %19, %cst_19 {dimension_numbers = #tpu.dot_dimension_numbers<[1], [0], [0], [1], [0, 0, 1, 1], [], []>} : vector<8x32xf32>, vector<32x16xf32>, vector<8x16xf32> -> vector<8x16xf32>
    %c0_20 = arith.constant 0 : index
    %c0_21 = arith.constant 0 : index
    %21 = vector.load %arg9[%c0_20, %c0_21] : memref<1x16xf32, #tpu.memory_space<vmem>>, vector<1x16xf32>
    %22 = vector.broadcast %21 : vector<1x16xf32> to vector<8x16xf32>
    %23 = arith.addf %20, %22 : vector<8x16xf32>
    %24 = arith.negf %23 : vector<8x16xf32>
    %25 = math.exp %24 : vector<8x16xf32>
    %cst_22 = arith.constant 1.000000e+00 : f32
    %26 = vector.broadcast %cst_22 : f32 to vector<8x16xf32>
    %27 = arith.addf %26, %25 : vector<8x16xf32>
    %28 = arith.divf %26, %27 : vector<8x16xf32>
    %c0_23 = arith.constant 0 : index
    %c0_24 = arith.constant 0 : index
    %29 = vector.load %arg10[%c0_23, %c0_24] : memref<8x16xf32, #tpu.memory_space<vmem>>, vector<8x16xf32>
    tpu.vector_store %arg10[%c0_23, %c0_24], %28 {strides = array<i32>} : memref<8x16xf32, #tpu.memory_space<vmem>>, vector<8x16xf32>,
    return
  }
  func.func @transform_0(%arg0: i32) -> (i32, i32) {
    %c0_i32 = arith.constant 0 : i32
    %c0_i32_0 = arith.constant 0 : i32
    return %arg0, %c0_i32 : i32, i32
  }
  func.func @transform_1(%arg0: i32) -> (i32, i32) {
    %c0_i32 = arith.constant 0 : i32
    %c0_i32_0 = arith.constant 0 : i32
    return %arg0, %c0_i32 : i32, i32
  }
  func.func @transform_2(%arg0: i32) -> (i32, i32) {
    %c0_i32 = arith.constant 0 : i32
    %c0_i32_0 = arith.constant 0 : i32
    %c0_i32_1 = arith.constant 0 : i32
    return %c0_i32, %c0_i32_0 : i32, i32
  }
  func.func @transform_3(%arg0: i32) -> (i32, i32) {
    %c0_i32 = arith.constant 0 : i32
    %c0_i32_0 = arith.constant 0 : i32
    %c0_i32_1 = arith.constant 0 : i32
    return %c0_i32, %c0_i32_0 : i32, i32
  }
  func.func @transform_4(%arg0: i32) -> (i32, i32) {
    %c0_i32 = arith.constant 0 : i32
    %c0_i32_0 = arith.constant 0 : i32
    %c0_i32_1 = arith.constant 0 : i32
    return %c0_i32, %c0_i32_0 : i32, i32
  }
  func.func @transform_5(%arg0: i32) -> (i32, i32) {
    %c0_i32 = arith.constant 0 : i32
    %c0_i32_0 = arith.constant 0 : i32
    %c0_i32_1 = arith.constant 0 : i32
    return %c0_i32, %c0_i32_0 : i32, i32
  }
  func.func @transform_6(%arg0: i32) -> (i32, i32) {
    %c0_i32 = arith.constant 0 : i32
    %c0_i32_0 = arith.constant 0 : i32
    %c0_i32_1 = arith.constant 0 : i32
    return %c0_i32, %c0_i32_0 : i32, i32
  }
  func.func @transform_7(%arg0: i32) -> (i32, i32) {
    %c0_i32 = arith.constant 0 : i32
    %c0_i32_0 = arith.constant 0 : i32
    %c0_i32_1 = arith.constant 0 : i32
    return %c0_i32, %c0_i32_0 : i32, i32
  }
  func.func @transform_8(%arg0: i32) -> (i32, i32) {
    %c0_i32 = arith.constant 0 : i32
    %c0_i32_0 = arith.constant 0 : i32
    %c0_i32_1 = arith.constant 0 : i32
    return %c0_i32, %c0_i32_0 : i32, i32
  }
  func.func @transform_9(%arg0: i32) -> (i32, i32) {
    %c0_i32 = arith.constant 0 : i32
    %c0_i32_0 = arith.constant 0 : i32
    return %arg0, %c0_i32 : i32, i32
  }
}

</mosaic_0001>

<bundles_post_ra>
// kernel: discriminator_forward.1
= control target key start
LH: loop header
LB: loop body
LE: loop exit
PB: predicated region body
PF: predicated region fallthrough
CT: control target
= control target key end

     0   :  { %v496_v3 = vmov 0.0|0.0   ;;  %vm497_vm0 = vmmov 0   ;;  %v498_v7 = vmov 0.0   ;;  %s616_s0 = inlined_call_operand.vmem [shape: f32[8,16], index: 0, kind: input, shape index: {}]   ;;  %s617_s1 = inlined_call_operand.vmem [shape: f32[8,16], index: 1, kind: input, shape index: {}]   ;;  %s618_s2 = inlined_call_operand.vmem [shape: f32[16,32], index: 2, kind: input, shape index: {}]   ;;  %s619_s3 = inlined_call_operand.vmem [shape: f32[16,32], index: 3, kind: input, shape index: {}]   ;;  %s620_s4 = inlined_call_operand.vmem [shape: f32[1,32], index: 4, kind: input, shape index: {}]   ;;  %s621_s5 = inlined_call_operand.vmem [shape: f32[32,32], index: 5, kind: input, shape index: {}]   ;;  %s622_s6 = inlined_call_operand.vmem [shape: f32[1,32], index: 6, kind: input, shape index: {}]   ;;  %s623_s7 = inlined_call_operand.vmem [shape: f32[32,16], index: 7, kind: input, shape index: {}]   ;;  %s624_s8 = inlined_call_operand.vmem [shape: f32[1,16], index: 8, kind: input, shape index: {}]   ;;  %s625_s9 = inlined_call_operand.hbm [shape: f32[8,16], index: 9, kind: output, shape index: {}]  }
   0x1   :  { %v37_v0 = vld [vmem:[%s619_s3] sm:$0xff]  ;;  %v38_v1 = vld [vmem:[%s619_s3 + $0x8] sm:$0xff]  ;;  %446 = vmatprep.subr.bf16.mxu0 %v496_v3  ;;  %449 = vmatprep.subr.bf16.mxu1 %v496_v3 }
   0x2   :  { %v34_v2 = vld [vmem:[%s618_s2] sm:$0xff]  ;;  %v447_v4 = vpack.c.bf16 %v38_v1, %v37_v0  ;;  %v35_v5 = vld [vmem:[%s618_s2 + $0x8] sm:$0xff]  ;;  %414 = vmatprep.mubr.msk.f32.mxu0 %vm497_vm0, %v498_v7  ;;  %421 = vmatprep.mubr.msk.f32.mxu1 %vm497_vm0, %v498_v7 }
   0x3   :  { %v450_v6 = vpack.c.bf16 %v35_v5, %v34_v2 }
   0x4   :  { %14 = vsyncpa [#allocation3], 0  ;;  %448 = vmatpush3.bf16.msra.mxu0 %v447_v4  ;;  %v36_v8 = vld [vmem:[%s617_s1] sm:$0xff]  ;;  %vm39_vm1 = vcmask 130048   ;;  %v196_v11 = vld [vmem:[%s621_s5 + $0x8] sm:$0xff]  ;;  %vm206_vm2 = vcmask 261120  }
   0x5   :  { %451 = vmatpush3.bf16.msra.mxu1 %v450_v6  ;;  %v33_v9 = vld [vmem:[%s616_s0] sm:$0xff]  ;;  %452 = vmatprep.subr.bf16.mxu0 %v496_v3  ;;  %v197_v13 = vld [vmem:[%s621_s5 + $0x10] sm:$0xff]  ;;  %v198_v14 = vld [vmem:[%s621_s5 + $0x18] sm:$0xff] }
   0x6   :  { %458 = vmatprep.subr.bf16.mxu1 %v496_v3  ;;  %v195_v10 = vld [vmem:[%s621_s5] sm:$0xff]  ;;  %v456_v15 = vpack.c.bf16 %v198_v14, %v197_v13  ;;  %v282_v17 = vld [vmem:[%s623_s7 + $0x8] sm:$0xff]  ;;  %v283_v27 = vld [vmem:[%s623_s7 + $0x10] sm:$0xff] }
   0x7   :  { %415 = vmatmul.mubr.msk.f32.vlgmr.msra.gmra.mrb[0].mxu0 %vm39_vm1, %v36_v8  ;;  %v453_v12 = vpack.c.bf16 %v196_v11, %v195_v10  ;;  %v281_v16 = vld [vmem:[%s623_s7] sm:$0xff]  ;;  %v284_v28 = vld [vmem:[%s623_s7 + $0x18] sm:$0xff]  ;;  %s499_s7 = smov [#allocation2]  }
   0x8   :  { %422 = vmatmul.mubr.msk.f32.vlgmr.msra.gmra.mrb[0].mxu1 %vm39_vm1, %v33_v9  ;;  %432 = vmatprep.mubr.msk.f32.mxu0 %vm497_vm0, %v498_v7  ;;  %v459_v18 = vpack.c.bf16 %v282_v17, %v281_v16  ;;  %v388_v21 = vld [vmem:[%s620_s4] ss:$0 sm:$0xff]  ;;  %v462_v29 = vpack.c.bf16 %v284_v28, %v283_v27  ;;  %s378_s16 = sshll.u32 %s499_s7, 4  ;;  %s379_s16 = int_to_ptr.vmem [resolvable:$true] %s378_s16 }
   0x9   :  { %443 = vmatprep.mubr.msk.f32.mxu1 %vm497_vm0, %v498_v7  ;;  %454 = vmatpush3.bf16.msra.mxu0 %v453_v12  ;;  %v389_v30 = vld [vmem:[%s622_s6] ss:$0 sm:$0xff]  ;;  %s472_s6 = scalar_lea.vmem %s379_s16, 128  ;;  %p477_p1 = scmp.lt.s32.totalorder %s379_s16, %s379_s16 }
   0xa   :  { %455 = vmatprep.subr.bf16.mxu0 %v496_v3  ;;  %460 = vmatpush3.bf16.msra.mxu1 %v459_v18  ;;  %v391_v35 = vld [vmem:[%s624_s8] ss:$0 sm:$0xff]  ;;  %p473_p0 = scmp.ne.s32.totalorder %s379_s16, %s472_s6  ;;  %p478_p2 = scmp.lt.s32.totalorder %s472_s6, %s472_s6 }
   0xb   :  { %461 = vmatprep.subr.bf16.mxu1 %v496_v3 }
   0xc   :  { %p479_p3 = por %p478_p2, %p477_p1 }
   0xd   :  { %457 = vmatpush3.bf16.msra.mxu0 %v456_v15 }
   0xe   :  { %463 = vmatpush3.bf16.msra.mxu1 %v462_v29  ;;  %p480_p4 = pnand %p479_p3, %p473_p0 }
  0xda   :  { %v109_v19 = vpop.f32.mrb[0].mxu0 }
  0xdb   :  { %v182_v20 = vpop.f32.mrb[0].mxu1  ;;  %v416_v22 = vpop.f32.mrb[1].mxu0 }
  0xdc   :  { %v183_v23 = vadd.f32 %v182_v20, %v109_v19  ;;  %v423_v24 = vpop.f32.mrb[1].mxu1 }
  0xde   :  { %v193_v25 = vadd.f32 %v388_v21, %v183_v23 }
  0xe0   :  { %v194_v26 = vmax.f32 %v193_v25, 0.0 }
  0xe2   :  { %433 = vmatmul.mubr.msk.f32.vlgmr.msra.gmra.mrb[2].mxu0 %vm206_vm2, %v194_v26 }
 0x1b5   :  { %v276_v31 = vpop.f32.mrb[2].mxu0 }
 0x1b6   :  { %v277_v32 = vadd.f32 %v389_v30, %v276_v31  ;;  %v434_v33 = vpop.f32.mrb[3].mxu0 }
 0x1b8   :  { %v280_v34 = vmax.f32 %v277_v32, 0.0 }
 0x1ba   :  { %444 = vmatmul.mubr.msk.f32.vlgmr.msra.gmra.mrb[2].mxu1 %vm206_vm2, %v280_v34 }
 0x28d   :  { %v361_v36 = vpop.f32.mrb[2].mxu1 }
 0x28e   :  { %v362_v37 = vadd.f32 %v391_v35, %v361_v36  ;;  %v445_v38 = vpop.f32.mrb[3].mxu1 }
 0x290   :  { %v393_v39 = vmul.f32 -1.442695, %v362_v37 }
 0x292   :  { %468 = vpow2.f32 %v393_v39 }
 0x29c   :  { %v469_v40 = vpop.eup %468 }
 0x29d   :  { %v368_v41 = vadd.f32 1.0, %v469_v40 }
 0x29f   :  { %470 = vrcp.f32 %v368_v41 }
 0x2a9   :  { %v471_v42 = vpop.eup %470 }
 0x2aa   :  { %371 = vst.msk [vmem:[#allocation2] sm:$0xff] %vm39_vm1, %v471_v42 }
 0x2ab   :  { %483 = shalt.err (!%p480_p4)
}
 0x2ac   :  { %s484_s17 = scalar_lea.hbm %s625_s9, 128 }
 0x2ad   :  { %p485_p5 = scmp.ne.s32.totalorder %s625_s9, %s484_s17  ;;  %p488_p6 = scmp.lt.u32.totalorder %s484_s17, %s625_s9 }
 0x2af   :  { %p490_p7 = pnand %p488_p6, %p485_p5 }
 0x2b1   :  { %493 = shalt.err (!%p490_p7)
}
 0x2b2   :  { %381 = dma.vmem_to_hbm [thread:$0]  %s379_s16, 128, %s625_s9, [#allocation3]  }
 0x2b3   :  { %494 = dma.done.wait [#allocation3], 128  }
 0x2b4   :  { %495 = vsyncadd [#allocation3], 4294967168 }
 0x2b5   :  { %385 = vsyncpa [#allocation3], 1 }

// kernel: discriminator_forward.1
= control target key start
LH: loop header
LB: loop body
LE: loop exit
PB: predicated region body
PF: predicated region fallthrough
CT: control target
= control target key end

     0   :  { %v496_v3 = vmov 0.0|0.0   ;;  %vm497_vm0 = vmmov 0   ;;  %v498_v7 = vmov 0.0   ;;  %s616_s0 = inlined_call_operand.vmem [shape: f32[8,16], index: 0, kind: input, shape index: {}]   ;;  %s617_s1 = inlined_call_operand.vmem [shape: f32[8,16], index: 1, kind: input, shape index: {}]   ;;  %s618_s2 = inlined_call_operand.vmem [shape: f32[16,32], index: 2, kind: input, shape index: {}]   ;;  %s619_s3 = inlined_call_operand.vmem [shape: f32[16,32], index: 3, kind: input, shape index: {}]   ;;  %s620_s4 = inlined_call_operand.vmem [shape: f32[1,32], index: 4, kind: input, shape index: {}]   ;;  %s621_s5 = inlined_call_operand.vmem [shape: f32[32,32], index: 5, kind: input, shape index: {}]   ;;  %s622_s6 = inlined_call_operand.vmem [shape: f32[1,32], index: 6, kind: input, shape index: {}]   ;;  %s623_s7 = inlined_call_operand.vmem [shape: f32[32,16], index: 7, kind: input, shape index: {}]   ;;  %s624_s8 = inlined_call_operand.vmem [shape: f32[1,16], index: 8, kind: input, shape index: {}]   ;;  %s625_s9 = inlined_call_operand.hbm [shape: f32[8,16], index: 9, kind: output, shape index: {}]  }
   0x1   :  { %v37_v0 = vld [vmem:[%s619_s3] sm:$0xff]  ;;  %v38_v1 = vld [vmem:[%s619_s3 + $0x8] sm:$0xff]  ;;  %446 = vmatprep.subr.bf16.mxu0 %v496_v3  ;;  %449 = vmatprep.subr.bf16.mxu1 %v496_v3 }
   0x2   :  { %v34_v2 = vld [vmem:[%s618_s2] sm:$0xff]  ;;  %v447_v4 = vpack.c.bf16 %v38_v1, %v37_v0  ;;  %v35_v5 = vld [vmem:[%s618_s2 + $0x8] sm:$0xff]  ;;  %414 = vmatprep.mubr.msk.f32.mxu0 %vm497_vm0, %v498_v7  ;;  %421 = vmatprep.mubr.msk.f32.mxu1 %vm497_vm0, %v498_v7 }
   0x3   :  { %v450_v6 = vpack.c.bf16 %v35_v5, %v34_v2 }
   0x4   :  { %14 = vsyncpa [#allocation3], 0  ;;  %448 = vmatpush3.bf16.msra.mxu0 %v447_v4  ;;  %v36_v8 = vld [vmem:[%s617_s1] sm:$0xff]  ;;  %vm39_vm1 = vcmask 130048   ;;  %v196_v11 = vld [vmem:[%s621_s5 + $0x8] sm:$0xff]  ;;  %vm206_vm2 = vcmask 261120  }
   0x5   :  { %451 = vmatpush3.bf16.msra.mxu1 %v450_v6  ;;  %v33_v9 = vld [vmem:[%s616_s0] sm:$0xff]  ;;  %452 = vmatprep.subr.bf16.mxu0 %v496_v3  ;;  %v197_v13 = vld [vmem:[%s621_s5 + $0x10] sm:$0xff]  ;;  %v198_v14 = vld [vmem:[%s621_s5 + $0x18] sm:$0xff] }
   0x6   :  { %458 = vmatprep.subr.bf16.mxu1 %v496_v3  ;;  %v195_v10 = vld [vmem:[%s621_s5] sm:$0xff]  ;;  %v456_v15 = vpack.c.bf16 %v198_v14, %v197_v13  ;;  %v282_v17 = vld [vmem:[%s623_s7 + $0x8] sm:$0xff]  ;;  %v283_v27 = vld [vmem:[%s623_s7 + $0x10] sm:$0xff] }
   0x7   :  { %415 = vmatmul.mubr.msk.f32.vlgmr.msra.gmra.mrb[0].mxu0 %vm39_vm1, %v36_v8  ;;  %v453_v12 = vpack.c.bf16 %v196_v11, %v195_v10  ;;  %v281_v16 = vld [vmem:[%s623_s7] sm:$0xff]  ;;  %v284_v28 = vld [vmem:[%s623_s7 + $0x18] sm:$0xff]  ;;  %s499_s7 = smov [#allocation2]  }
   0x8   :  { %422 = vmatmul.mubr.msk.f32.vlgmr.msra.gmra.mrb[0].mxu1 %vm39_vm1, %v33_v9  ;;  %432 = vmatprep.mubr.msk.f32.mxu0 %vm497_vm0, %v498_v7  ;;  %v459_v18 = vpack.c.bf16 %v282_v17, %v281_v16  ;;  %v388_v21 = vld [vmem:[%s620_s4] ss:$0 sm:$0xff]  ;;  %v462_v29 = vpack.c.bf16 %v284_v28, %v283_v27  ;;  %s378_s16 = sshll.u32 %s499_s7, 4  ;;  %s379_s16 = int_to_ptr.vmem [resolvable:$true] %s378_s16 }
   0x9   :  { %443 = vmatprep.mubr.msk.f32.mxu1 %vm497_vm0, %v498_v7  ;;  %454 = vmatpush3.bf16.msra.mxu0 %v453_v12  ;;  %v389_v30 = vld [vmem:[%s622_s6] ss:$0 sm:$0xff]  ;;  %s472_s6 = scalar_lea.vmem %s379_s16, 128  ;;  %p477_p1 = scmp.lt.s32.totalorder %s379_s16, %s379_s16 }
   0xa   :  { %455 = vmatprep.subr.bf16.mxu0 %v496_v3  ;;  %460 = vmatpush3.bf16.msra.mxu1 %v459_v18  ;;  %v391_v35 = vld [vmem:[%s624_s8] ss:$0 sm:$0xff]  ;;  %p473_p0 = scmp.ne.s32.totalorder %s379_s16, %s472_s6  ;;  %p478_p2 = scmp.lt.s32.totalorder %s472_s6, %s472_s6 }
   0xb   :  { %461 = vmatprep.subr.bf16.mxu1 %v496_v3 }
   0xc   :  { %p479_p3 = por %p478_p2, %p477_p1 }
   0xd   :  { %457 = vmatpush3.bf16.msra.mxu0 %v456_v15 }
   0xe   :  { %463 = vmatpush3.bf16.msra.mxu1 %v462_v29  ;;  %p480_p4 = pnand %p479_p3, %p473_p0 }
  0xda   :  { %v109_v19 = vpop.f32.mrb[0].mxu0 }
  0xdb   :  { %v182_v20 = vpop.f32.mrb[0].mxu1  ;;  %v416_v22 = vpop.f32.mrb[1].mxu0 }
  0xdc   :  { %v183_v23 = vadd.f32 %v182_v20, %v109_v19  ;;  %v423_v24 = vpop.f32.mrb[1].mxu1 }
  0xde   :  { %v193_v25 = vadd.f32 %v388_v21, %v183_v23 }
  0xe0   :  { %v194_v26 = vmax.f32 %v193_v25, 0.0 }
  0xe2   :  { %433 = vmatmul.mubr.msk.f32.vlgmr.msra.gmra.mrb[2].mxu0 %vm206_vm2, %v194_v26 }
 0x1b5   :  { %v276_v31 = vpop.f32.mrb[2].mxu0 }
 0x1b6   :  { %v277_v32 = vadd.f32 %v389_v30, %v276_v31  ;;  %v434_v33 = vpop.f32.mrb[3].mxu0 }
 0x1b8   :  { %v280_v34 = vmax.f32 %v277_v32, 0.0 }
 0x1ba   :  { %444 = vmatmul.mubr.msk.f32.vlgmr.msra.gmra.mrb[2].mxu1 %vm206_vm2, %v280_v34 }
 0x28d   :  { %v361_v36 = vpop.f32.mrb[2].mxu1 }
 0x28e   :  { %v362_v37 = vadd.f32 %v391_v35, %v361_v36  ;;  %v445_v38 = vpop.f32.mrb[3].mxu1 }
 0x290   :  { %v393_v39 = vmul.f32 -1.442695, %v362_v37 }
 0x292   :  { %468 = vpow2.f32 %v393_v39 }
 0x29c   :  { %v469_v40 = vpop.eup %468 }
 0x29d   :  { %v368_v41 = vadd.f32 1.0, %v469_v40 }
 0x29f   :  { %470 = vrcp.f32 %v368_v41 }
 0x2a9   :  { %v471_v42 = vpop.eup %470 }
 0x2aa   :  { %371 = vst.msk [vmem:[#allocation2] sm:$0xff] %vm39_vm1, %v471_v42 }
 0x2ab   :  { %483 = shalt.err (!%p480_p4)
}
 0x2ac   :  { %s484_s17 = scalar_lea.hbm %s625_s9, 128 }
 0x2ad   :  { %p485_p5 = scmp.ne.s32.totalorder %s625_s9, %s484_s17  ;;  %p488_p6 = scmp.lt.u32.totalorder %s484_s17, %s625_s9 }
 0x2af   :  { %p490_p7 = pnand %p488_p6, %p485_p5 }
 0x2b1   :  { %493 = shalt.err (!%p490_p7)
}
 0x2b2   :  { %381 = dma.vmem_to_hbm [thread:$0]  %s379_s16, 128, %s625_s9, [#allocation3]  }
 0x2b3   :  { %494 = dma.done.wait [#allocation3], 128  }
 0x2b4   :  { %495 = vsyncadd [#allocation3], 4294967168 }
 0x2b5   :  { %385 = vsyncpa [#allocation3], 1 }

</bundles_post_ra>
